<compile_context>
chip_gen: v6e
topology: v6e:2x2x1
jax: 0.10.0
libtpu: 0.0.40
codegen_flags: <defaults>
</compile_context>

<pallas_src>
import numpy as np
import jax
import jax.numpy as jnp
from jax.experimental import pallas as pl
from jax.experimental.pallas import tpu as pltpu


# ----------------------------------------------------------------------------
# Fused kernel: streamed frame-sum + adaptive-avg-pool + 1x1 conv + Linear head
# ----------------------------------------------------------------------------
def bitneck_kernel(x_ref, pmat_ref, wc_ref, bc_ref, fcw_ref, fcb_ref, o_ref,
                   xsum_ref):
    # x_ref   : (1, 1, C, HW)  one frame, native NCHW layout (spatial flattened)
    # pmat_ref: (PS2, HW)      adaptive-avg-pool matrix, pre-scaled by 1/T
    # wc_ref  : (C, P)         1x1 conv weight
    # bc_ref  : (1, P)         conv bias
    # fcw_ref : (PS2, P, O)    fc weight; fcw[s, p, o] == fc_w[p*PS2 + s, o]
    # fcb_ref : (1, O)         fc bias
    # o_ref   : (1, 1, O)
    # xsum_ref: (C, HW)        VMEM scratch, running sum over frames
    t = pl.program_id(1)

    @pl.when(t == 0)
    def _():
        xsum_ref[...] = jnp.zeros_like(xsum_ref)

    # Frame accumulation: cheap VPU adds, fully hidden under the frame DMA.
    xsum_ref[...] += x_ref[0, 0]

    @pl.when(t == pl.num_programs(1) - 1)
    def _():
        # Adaptive average pool (+ frame mean via pre-scaled pmat) as a matmul:
        # pooled[s, c] = sum_h pmat_scaled[s, h] * xsum[c, h]      -> (PS2, C)
        pooled = jnp.einsum("sh,ch->sc", pmat_ref[...], xsum_ref[...],
                            preferred_element_type=jnp.float32)

        # 1x1 conv on the pooled pixels: (PS2, C) @ (C, P) + bias -> (PS2, P)
        y = jnp.dot(pooled, wc_ref[...],
                    preferred_element_type=jnp.float32) + bc_ref[...]

        # Linear head (frame-mean already applied); per-spatial-cell weight
        # slabs avoid any in-kernel flatten/relayout of y.
        acc = fcb_ref[...]                          # (1, O)
        for s in range(fcw_ref.shape[0]):           # static unroll over PS2
            acc = acc + jnp.dot(y[s:s + 1, :], fcw_ref[s],
                                preferred_element_type=jnp.float32)
        o_ref[0] = acc


def run_bitneck(x_btchw, pmat_scaled, conv_w, conv_b, fcw_spo, fc_b):
    B, T, C, HW = x_btchw.shape
    PS2 = pmat_scaled.shape[0]
    P = conv_w.shape[1]
    O = fc_b.shape[1]
    out = pl.pallas_call(
        bitneck_kernel,
        out_shape=jax.ShapeDtypeStruct((B, 1, O), jnp.float32),
        grid_spec=pltpu.PrefetchScalarGridSpec(
            num_scalar_prefetch=0,
            grid=(B, T),
            in_specs=[
                pl.BlockSpec((1, 1, C, HW), lambda b, t: (b, t, 0, 0)),
                pl.BlockSpec((PS2, HW), lambda b, t: (0, 0)),
                pl.BlockSpec((C, P), lambda b, t: (0, 0)),
                pl.BlockSpec((1, P), lambda b, t: (0, 0)),
                pl.BlockSpec((PS2, P, O), lambda b, t: (0, 0, 0)),
                pl.BlockSpec((1, O), lambda b, t: (0, 0)),
            ],
            out_specs=pl.BlockSpec((1, 1, O), lambda b, t: (b, 0, 0)),
            scratch_shapes=[pltpu.VMEM((C, HW), jnp.float32)],
        ),
        compiler_params=pltpu.CompilerParams(
            dimension_semantics=("parallel", "arbitrary")),
    )(x_btchw, pmat_scaled, conv_w, conv_b, fcw_spo, fc_b)
    return out.reshape(B, O)


# ----------------------------------------------------------------------------
# Full BitNeck forward (glue in plain JAX; all compute in the Pallas kernel)
# ----------------------------------------------------------------------------
def bit_neck_forward(x_dict, params, *, layer, roi, num_frames, pooling_size):
    x = x_dict[layer]                              # (N, C, H, W) NCHW (PyTorch)
    N, C, H, W = x.shape
    B = N // num_frames
    T = num_frames
    ps = pooling_size
    PS2 = ps * ps
    P = params["conv_w"].shape[1]
    O = params["fc_w"].shape[1]

    # Free, contiguous reshape (no transpose of the big activation tensor).
    x_r = x.reshape(B, T, C, H * W)

    # Tiny one-time host-side prep (would be precomputed offline in inference):
    #   * fold the frame-mean 1/T into the pool matrix
    #   * re-lay the FC weight so fcw[s, p, o] == fc_w[p*PS2 + s, o]
    pmat_scaled = params["pool_mat"] * (1.0 / T)
    fcw_spo = params["fc_w"].reshape(P, PS2, O).transpose(1, 0, 2)

    out = run_bitneck(x_r, pmat_scaled, params["conv_w"], params["conv_b"],
                      fcw_spo, params["fc_b"])     # (B, O)
    return ({roi: out}, None)


# ----------------------------------------------------------------------------
# Pure-JAX reference for validation (follows the PyTorch op order exactly)
# ----------------------------------------------------------------------------
def bit_neck_reference(x_dict, params, *, layer, roi, num_frames, pooling_size):
    x = x_dict[layer]
    N, C, H, W = x.shape
    B = N // num_frames
    ps = pooling_size
    P = params["conv_w"].shape[1]
    # 1x1 conv
    y = jnp.einsum("nchw,cp->nphw", x, params["conv_w"]) \
        + params["conv_b"][0][None, :, None, None]
    # adaptive avg pool (H, W divisible by ps)
    kh, kw = H // ps, W // ps
    y = y.reshape(N, P, ps, kh, ps, kw).mean(axis=(3, 5))           # (N,P,ps,ps)
    feats = y.reshape(B, num_frames, P * ps * ps)
    out = feats @ params["fc_w"] + params["fc_b"][0]
    out = out.mean(axis=1)
    return ({roi: out}, None)


def make_pool_matrix(H, W, ps):
    kh, kw = H // ps, W // ps
    m = np.zeros((ps * ps, H * W), dtype=np.float32)
    for i in range(ps):
        for j in range(ps):
            for h in range(i * kh, (i + 1) * kh):
                for w in range(j * kw, (j + 1) * kw):
                    m[i * ps + j, h * W + w] = 1.0 / (kh * kw)
    return jnp.asarray(m)


if __name__ == "__main__":
    # Small, module-consistent configuration (scaled-down feature map).
    B = 2            # videos
    T = 4            # video_frames
    C = 64           # input channels (c_dict[layer], scaled down)
    H = W = 8        # spatial size of the pyramid feature map
    P = 32           # planes = conv_size
    PS = 2           # pooling_size (adaptive avg pool output)
    OUT = 16         # output_size
    LAYER, ROI = "x3", "WB"
    IN_DIM = P * PS * PS

    key = jax.random.PRNGKey(0)
    k_x, k_cw, k_cb, k_fw, k_fb = jax.random.split(key, 5)

    x_in = jax.random.normal(k_x, (B * T, C, H, W), dtype=jnp.float32)

    params = {
        "conv_w": jax.random.normal(k_cw, (C, P), dtype=jnp.float32) * 0.05,
        "conv_b": jax.random.normal(k_cb, (1, P), dtype=jnp.float32) * 0.05,
        "pool_mat": make_pool_matrix(H, W, PS),
        "fc_w": jax.random.normal(k_fw, (IN_DIM, OUT), dtype=jnp.float32) * 0.05,
        "fc_b": jax.random.normal(k_fb, (1, OUT), dtype=jnp.float32) * 0.05,
    }

    x_dict = {LAYER: x_in}

    out_dict, out_aux = bit_neck_forward(
        x_dict, params, layer=LAYER, roi=ROI, num_frames=T, pooling_size=PS)
    result = out_dict[ROI]
    jax.block_until_ready(result)

    # Validate against the pure-JAX reference.
    ref_dict, _ = bit_neck_reference(
        x_dict, params, layer=LAYER, roi=ROI, num_frames=T, pooling_size=PS)
    ref = ref_dict[ROI]
    assert result.shape == (B, OUT)
    np.testing.assert_allclose(np.asarray(result), np.asarray(ref),
                               rtol=1e-4, atol=1e-4)

    print("KERNEL_OK")
</pallas_src>

<mosaic_0001>
module attributes {stable_mosaic.version = 11 : i64} {
  func.func @bitneck_kernel(%arg0: i32, %arg1: i32, %arg2: memref<1x1x64x64xf32, #tpu.memory_space<vmem>>, %arg3: memref<4x64xf32, #tpu.memory_space<vmem>>, %arg4: memref<64x32xf32, #tpu.memory_space<vmem>>, %arg5: memref<1x32xf32, #tpu.memory_space<vmem>>, %arg6: memref<4x32x16xf32, #tpu.memory_space<vmem>>, %arg7: memref<1x16xf32, #tpu.memory_space<vmem>>, %arg8: memref<1x1x16xf32, #tpu.memory_space<vmem>>, %arg9: memref<64x64xf32, #tpu.memory_space<vmem>>) attributes {dimension_semantics = [#tpu.dimension_semantics<parallel>, #tpu.dimension_semantics<arbitrary>], iteration_bounds = array<i64: 2, 4>, scalar_prefetch = 0 : i64, scratch_operands = 1 : i64, tpu.core_type = #tpu.core_type<tc>, window_params = [{transform_indices = @transform_0, window_bounds = array<i64: 1, 1, 64, 64>}, {pipeline_mode = #tpu.pipeline_mode<synchronous>, transform_indices = @transform_1, window_bounds = array<i64: 4, 64>}, {pipeline_mode = #tpu.pipeline_mode<synchronous>, transform_indices = @transform_2, window_bounds = array<i64: 64, 32>}, {pipeline_mode = #tpu.pipeline_mode<synchronous>, transform_indices = @transform_3, window_bounds = array<i64: 1, 32>}, {pipeline_mode = #tpu.pipeline_mode<synchronous>, transform_indices = @transform_4, window_bounds = array<i64: 4, 32, 16>}, {pipeline_mode = #tpu.pipeline_mode<synchronous>, transform_indices = @transform_5, window_bounds = array<i64: 1, 16>}, {transform_indices = @transform_6, window_bounds = array<i64: 1, 1, 16>}]} {
    %c0_i32 = arith.constant 0 : i32
    %0 = arith.cmpi eq, %arg1, %c0_i32 : i32
    %1 = arith.extui %0 : i1 to i32
    %c0_i32_0 = arith.constant 0 : i32
    %2 = arith.cmpi ne, %1, %c0_i32_0 : i32
    scf.if %2 {
      %cst = arith.constant 0.000000e+00 : f32
      %11 = vector.broadcast %cst : f32 to vector<64x64xf32>
      %c0_9 = arith.constant 0 : index
      %c0_10 = arith.constant 0 : index
      %12 = vector.load %arg9[%c0_9, %c0_10] : memref<64x64xf32, #tpu.memory_space<vmem>>, vector<64x64xf32>
      tpu.vector_store %arg9[%c0_9, %c0_10], %11 {strides = array<i32>} : memref<64x64xf32, #tpu.memory_space<vmem>>, vector<64x64xf32>,
    } else {
    }
    %c0 = arith.constant 0 : index
    %c0_1 = arith.constant 0 : index
    %3 = vector.load %arg9[%c0, %c0_1] : memref<64x64xf32, #tpu.memory_space<vmem>>, vector<64x64xf32>
    %c0_2 = arith.constant 0 : index
    %c0_3 = arith.constant 0 : index
    %c0_4 = arith.constant 0 : index
    %c0_5 = arith.constant 0 : index
    %4 = vector.load %arg2[%c0_2, %c0_3, %c0_4, %c0_5] : memref<1x1x64x64xf32, #tpu.memory_space<vmem>>, vector<1x1x64x64xf32>
    %5 = vector.shape_cast %4 : vector<1x1x64x64xf32> to vector<64x64xf32>
    %6 = arith.addf %3, %5 : vector<64x64xf32>
    %c0_6 = arith.constant 0 : index
    %c0_7 = arith.constant 0 : index
    %7 = vector.load %arg9[%c0_6, %c0_7] : memref<64x64xf32, #tpu.memory_space<vmem>>, vector<64x64xf32>
    tpu.vector_store %arg9[%c0_6, %c0_7], %6 {strides = array<i32>} : memref<64x64xf32, #tpu.memory_space<vmem>>, vector<64x64xf32>,
    %c3_i32 = arith.constant 3 : i32
    %8 = arith.cmpi eq, %arg1, %c3_i32 : i32
    %9 = arith.extui %8 : i1 to i32
    %c0_i32_8 = arith.constant 0 : i32
    %10 = arith.cmpi ne, %9, %c0_i32_8 : i32
    scf.if %10 {
      %c0_9 = arith.constant 0 : index
      %c0_10 = arith.constant 0 : index
      %11 = vector.load %arg3[%c0_9, %c0_10] : memref<4x64xf32, #tpu.memory_space<vmem>>, vector<4x64xf32>
      %c0_11 = arith.constant 0 : index
      %c0_12 = arith.constant 0 : index
      %12 = vector.load %arg9[%c0_11, %c0_12] : memref<64x64xf32, #tpu.memory_space<vmem>>, vector<64x64xf32>
      "tpu.trace_start"() <{level = 10 : i32, message = "sh,ch->sc"}> : () -> ()
      %cst = arith.constant dense<0.000000e+00> : vector<4x64xf32>
      %13 = tpu.matmul %11, %12, %cst {dimension_numbers = #tpu.dot_dimension_numbers<[1], [1], [0], [0], [0, 0, 1, 0], [], []>} : vector<4x64xf32>, vector<64x64xf32>, vector<4x64xf32> -> vector<4x64xf32>
      "tpu.trace_stop"() : () -> ()
      %c0_13 = arith.constant 0 : index
      %c0_14 = arith.constant 0 : index
      %14 = vector.load %arg4[%c0_13, %c0_14] : memref<64x32xf32, #tpu.memory_space<vmem>>, vector<64x32xf32>
      %cst_15 = arith.constant dense<0.000000e+00> : vector<4x32xf32>
      %15 = tpu.matmul %13, %14, %cst_15 {dimension_numbers = #tpu.dot_dimension_numbers<[1], [0], [0], [1], [0, 0, 1, 1], [], []>} : vector<4x64xf32>, vector<64x32xf32>, vector<4x32xf32> -> vector<4x32xf32>
      %c0_16 = arith.constant 0 : index
      %c0_17 = arith.constant 0 : index
      %16 = vector.load %arg5[%c0_16, %c0_17] : memref<1x32xf32, #tpu.memory_space<vmem>>, vector<1x32xf32>
      %17 = vector.broadcast %16 : vector<1x32xf32> to vector<4x32xf32>
      %18 = arith.addf %15, %17 : vector<4x32xf32>
      %c0_18 = arith.constant 0 : index
      %c0_19 = arith.constant 0 : index
      %19 = vector.load %arg7[%c0_18, %c0_19] : memref<1x16xf32, #tpu.memory_space<vmem>>, vector<1x16xf32>
      %20 = vector.extract_strided_slice %18 {offsets = [0, 0], sizes = [1, 32], strides = [1, 1]} : vector<4x32xf32> to vector<1x32xf32>
      %c0_20 = arith.constant 0 : index
      %c0_21 = arith.constant 0 : index
      %c0_22 = arith.constant 0 : index
      %21 = vector.load %arg6[%c0_20, %c0_21, %c0_22] : memref<4x32x16xf32, #tpu.memory_space<vmem>>, vector<1x32x16xf32>
      %22 = vector.shape_cast %21 : vector<1x32x16xf32> to vector<32x16xf32>
      %cst_23 = arith.constant dense<0.000000e+00> : vector<1x16xf32>
      %23 = tpu.matmul %20, %22, %cst_23 {dimension_numbers = #tpu.dot_dimension_numbers<[1], [0], [0], [1], [0, 0, 1, 1], [], []>} : vector<1x32xf32>, vector<32x16xf32>, vector<1x16xf32> -> vector<1x16xf32>
      %24 = arith.addf %19, %23 : vector<1x16xf32>
      %25 = vector.extract_strided_slice %18 {offsets = [1, 0], sizes = [1, 32], strides = [1, 1]} : vector<4x32xf32> to vector<1x32xf32>
      %c1 = arith.constant 1 : index
      %c0_24 = arith.constant 0 : index
      %c0_25 = arith.constant 0 : index
      %26 = vector.load %arg6[%c1, %c0_24, %c0_25] : memref<4x32x16xf32, #tpu.memory_space<vmem>>, vector<1x32x16xf32>
      %27 = vector.shape_cast %26 : vector<1x32x16xf32> to vector<32x16xf32>
      %cst_26 = arith.constant dense<0.000000e+00> : vector<1x16xf32>
      %28 = tpu.matmul %25, %27, %cst_26 {dimension_numbers = #tpu.dot_dimension_numbers<[1], [0], [0], [1], [0, 0, 1, 1], [], []>} : vector<1x32xf32>, vector<32x16xf32>, vector<1x16xf32> -> vector<1x16xf32>
      %29 = arith.addf %24, %28 : vector<1x16xf32>
      %30 = vector.extract_strided_slice %18 {offsets = [2, 0], sizes = [1, 32], strides = [1, 1]} : vector<4x32xf32> to vector<1x32xf32>
      %c2 = arith.constant 2 : index
      %c0_27 = arith.constant 0 : index
      %c0_28 = arith.constant 0 : index
      %31 = vector.load %arg6[%c2, %c0_27, %c0_28] : memref<4x32x16xf32, #tpu.memory_space<vmem>>, vector<1x32x16xf32>
      %32 = vector.shape_cast %31 : vector<1x32x16xf32> to vector<32x16xf32>
      %cst_29 = arith.constant dense<0.000000e+00> : vector<1x16xf32>
      %33 = tpu.matmul %30, %32, %cst_29 {dimension_numbers = #tpu.dot_dimension_numbers<[1], [0], [0], [1], [0, 0, 1, 1], [], []>} : vector<1x32xf32>, vector<32x16xf32>, vector<1x16xf32> -> vector<1x16xf32>
      %34 = arith.addf %29, %33 : vector<1x16xf32>
      %35 = vector.extract_strided_slice %18 {offsets = [3, 0], sizes = [1, 32], strides = [1, 1]} : vector<4x32xf32> to vector<1x32xf32>
      %c3 = arith.constant 3 : index
      %c0_30 = arith.constant 0 : index
      %c0_31 = arith.constant 0 : index
      %36 = vector.load %arg6[%c3, %c0_30, %c0_31] : memref<4x32x16xf32, #tpu.memory_space<vmem>>, vector<1x32x16xf32>
      %37 = vector.shape_cast %36 : vector<1x32x16xf32> to vector<32x16xf32>
      %cst_32 = arith.constant dense<0.000000e+00> : vector<1x16xf32>
      %38 = tpu.matmul %35, %37, %cst_32 {dimension_numbers = #tpu.dot_dimension_numbers<[1], [0], [0], [1], [0, 0, 1, 1], [], []>} : vector<1x32xf32>, vector<32x16xf32>, vector<1x16xf32> -> vector<1x16xf32>
      %39 = arith.addf %34, %38 : vector<1x16xf32>
      %c0_33 = arith.constant 0 : index
      %c0_34 = arith.constant 0 : index
      %c0_35 = arith.constant 0 : index
      %40 = vector.load %arg8[%c0_33, %c0_34, %c0_35] : memref<1x1x16xf32, #tpu.memory_space<vmem>>, vector<1x1x16xf32>
      %41 = vector.shape_cast %40 : vector<1x1x16xf32> to vector<1x16xf32>
      %42 = vector.shape_cast %39 : vector<1x16xf32> to vector<1x1x16xf32>
      tpu.vector_store %arg8[%c0_33, %c0_34, %c0_35], %42 {strides = array<i32>} : memref<1x1x16xf32, #tpu.memory_space<vmem>>, vector<1x1x16xf32>,
    } else {
    }
    return
  }
  func.func @transform_0(%arg0: i32, %arg1: i32) -> (i32, i32, i32, i32) {
    %c0_i32 = arith.constant 0 : i32
    %c0_i32_0 = arith.constant 0 : i32
    %c0_i32_1 = arith.constant 0 : i32
    return %arg0, %arg1, %c0_i32, %c0_i32_0 : i32, i32, i32, i32
  }
  func.func @transform_1(%arg0: i32, %arg1: i32) -> (i32, i32) {
    %c0_i32 = arith.constant 0 : i32
    %c0_i32_0 = arith.constant 0 : i32
    %c0_i32_1 = arith.constant 0 : i32
    return %c0_i32, %c0_i32_0 : i32, i32
  }
  func.func @transform_2(%arg0: i32, %arg1: i32) -> (i32, i32) {
    %c0_i32 = arith.constant 0 : i32
    %c0_i32_0 = arith.constant 0 : i32
    %c0_i32_1 = arith.constant 0 : i32
    return %c0_i32, %c0_i32_0 : i32, i32
  }
  func.func @transform_3(%arg0: i32, %arg1: i32) -> (i32, i32) {
    %c0_i32 = arith.constant 0 : i32
    %c0_i32_0 = arith.constant 0 : i32
    %c0_i32_1 = arith.constant 0 : i32
    return %c0_i32, %c0_i32_0 : i32, i32
  }
  func.func @transform_4(%arg0: i32, %arg1: i32) -> (i32, i32, i32) {
    %c0_i32 = arith.constant 0 : i32
    %c0_i32_0 = arith.constant 0 : i32
    %c0_i32_1 = arith.constant 0 : i32
    %c0_i32_2 = arith.constant 0 : i32
    return %c0_i32, %c0_i32_0, %c0_i32_1 : i32, i32, i32
  }
  func.func @transform_5(%arg0: i32, %arg1: i32) -> (i32, i32) {
    %c0_i32 = arith.constant 0 : i32
    %c0_i32_0 = arith.constant 0 : i32
    %c0_i32_1 = arith.constant 0 : i32
    return %c0_i32, %c0_i32_0 : i32, i32
  }
  func.func @transform_6(%arg0: i32, %arg1: i32) -> (i32, i32, i32) {
    %c0_i32 = arith.constant 0 : i32
    %c0_i32_0 = arith.constant 0 : i32
    %c0_i32_1 = arith.constant 0 : i32
    return %arg0, %c0_i32, %c0_i32_0 : i32, i32, i32
  }
}

</mosaic_0001>

<bundles_post_ra>
// kernel: tpu_custom_call.1
= control target key start
LH: loop header
LB: loop body
LE: loop exit
PB: predicated region body
PF: predicated region fallthrough
CT: control target
= control target key end

     0   :  { %s1745_s0 = inlined_call_operand.hbm [shape: f32[2,4,64,64], index: 0, kind: input, shape index: {}]   ;;  %s1746_s1 = inlined_call_operand.vmem [shape: f32[4,64], index: 1, kind: input, shape index: {}]   ;;  %s1747_s2 = inlined_call_operand.vmem [shape: f32[64,32], index: 2, kind: input, shape index: {}]   ;;  %s1748_s3 = inlined_call_operand.vmem [shape: f32[1,32], index: 3, kind: input, shape index: {}]   ;;  %s1749_s4 = inlined_call_operand.vmem [shape: f32[4,32,16], index: 4, kind: input, shape index: {}]   ;;  %s1750_s5 = inlined_call_operand.vmem [shape: f32[1,16], index: 5, kind: input, shape index: {}]   ;;  %s1751_s6 = inlined_call_operand.hbm [shape: f32[2,1,16], index: 6, kind: output, shape index: {}]  }
   0x1   :  { %1758 = sst [smem:[#allocation16_spill]] %s1751_s6 }
   0x2   :  { %11 = vsyncpa [#allocation4], 0 }
   0x3   :  { %13 = vsyncpa [#allocation4 + $0x1], 0 }
   0x4   :  { %14 = vsyncpa [#allocation5], 0 }
   0x5   :  { %16 = vsyncpa [#allocation5 + $0x1], 0  ;;  %s1402_s21 = smov 0   ;;  %s1404_s22 = smov 0  }
   0x6   :  { %s1406_s23 = smov 0   ;;  %s1408_s24 = smov 0  }
   0x7   :  { %s1410_s25 = smov 0   ;;  %s1412_s26 = smov 0  }
   0x8   :  { %s1414_s27 = smov 0   ;;  %s1416_s28 = smov 0  }
   0x9   :  { %s1418_s29 = smov 0   ;;  %s1420_s30 = smov 0  }
   0xa   :  { %s1422_s7 = smov 0  }
   0xb LB: > { %1759 = sst [smem:[#allocation9_spill]] %s1346_s28  ;;  %s941_s8 = sadd.s32 4294967295, %s1358_s7   ;;  %s1358_s7 = sphi %s1422_s7, %s22_s7   ;;  %s1354_s30 = sphi %s1420_s30, %s1787_s30   ;;  %s1350_s29 = sphi %s1418_s29, %s1778_s29   ;;  %s1346_s28 = sphi %s1416_s28, %s1786_s28   ;;  %s1342_s27 = sphi %s1414_s27, %s1777_s27   ;;  %s1338_s26 = sphi %s1412_s26, %s1785_s26   ;;  %s1334_s25 = sphi %s1410_s25, %s1784_s25   ;;  %s1330_s24 = sphi %s1408_s24, %s1783_s24   ;;  %s1326_s23 = sphi %s1406_s23, %s1782_s23   ;;  %s1322_s22 = sphi %s1404_s22, %s1781_s22   ;;  %s1318_s21 = sphi %s1402_s21, %s1780_s21  }
   0xc   : > { %1760 = sst [smem:[#allocation10_spill]] %s1350_s29  ;;  %s942_s9 = sadd.s32 4294967294, %s1358_s7  }
   0xd   : > { %s31_s10 = sadd.s32 1, %s1350_s29  ;;  %s34_s11 = sadd.s32 1, %s1354_s30 }
   0xe   : > { %p32_p0 = scmp.ge.s32.totalorder %s31_s10, 4  ;;  %s43_s12 = sadd.s32 1, %s1338_s26 }
   0xf   : > { %p50_p1 = scmp.ne.s32.totalorder %s1338_s26, %s1334_s25  ;;  %p51_p2 = scmp.eq.s32.totalorder %s1358_s7, 0 }
  0x10   : > { %s1789_s10 = smov (%p32_p0, %s31_s10), 0  ;;  %s1791_s11 = smov (!%p32_p0, %s34_s11), %s1354_s30 }
  0x11   : > { %1761 = sst [smem:[#allocation11_spill]] %s1789_s10  ;;  %s39_s13 = ssub.s32 %s1350_s29, %s1789_s10 }
  0x12   : > { %p1468_p3 = por %p51_p2, %p50_p1  ;;  %p36_p4 = scmp.ge.s32.totalorder %s1791_s11, 2 }
  0x13   : > { %p56_p5 = scmp.ne.s32.totalorder %s1334_s25, %s1330_s24  ;;  %p57_p6 = scmp.eq.s32.totalorder %s941_s8, 0 }
  0x14   : > { %s174_s15 = sadd.s32 1, %s1326_s23  ;;  %s1793_s11 = smov (%p36_p4, %s1791_s11), 0 }
  0x15   : > { %1763 = sst [smem:[#allocation12_spill]] %s1793_s11  ;;  %p1476_p7 = por %p57_p6, %p56_p5 }
  0x16   : > { %p184_p8 = scmp.ne.s32.totalorder %s1326_s23, %s1322_s22  ;;  %s38_s17 = ssub.s32 %s1354_s30, %s1793_s11 }
  0x17   : > { %p185_p9 = scmp.eq.s32.totalorder %s941_s8, 7  ;;  %s40_s18 = sor.u32 %s39_s13, %s38_s17 }
  0x18   : > { %p172_p10 = scmp.eq.s32.totalorder %s38_s17, 0  ;;  %p41_p11 = scmp.eq.s32.totalorder %s40_s18, 0 }
  0x19   : > { %p1484_p12 = por %p185_p9, %p184_p8  ;;  %p190_p13 = scmp.ne.s32.totalorder %s1322_s22, %s1318_s21 }
  0x1a   : > { %s1489_s20 = scalar_select %p172_p10, %s1326_s23, %s174_s15  }
  0x1b   : > { %s1765_s19 = scalar_select %p1484_p12, 1, 0 }
  0x1c   : > { %1767 = sst [smem:[#allocation14_spill]] %s1489_s20  ;;  %p191_p0 = scmp.eq.s32.totalorder %s942_s9, 7 }
  0x1d   : > { %1766 = sst [smem:[#allocation13_spill]] %s1765_s19  ;;  %p1115_p1 = scmp.lt.s32.totalorder %s1358_s7, 8 }
  0x1e   : > { %s1492_s24 = scalar_select %p41_p11, %s1338_s26, %s43_s12  }
  0x1f   : > { %p1497_p2 = por %p191_p0, %p190_p13  ;;  %s226_s8 = sand.u32 1, %s1338_s26  }
  0x20   : > { %1768 = sst [smem:[#allocation15_spill]] %s1492_s24  ;;  %s945_s13 = sshll.u32 %s226_s8, 6 }
  0x21   : > { %s946_s17 = sshll.u32 %s1350_s29, 3  ;;  %s947_s18 = sshll.u32 %s1354_s30, 5 }
  0x22   : > { %s230_s11 = scalar_lea.vmem [#allocation3], %s945_s13  ;;  %s236_s28 = sadd.s32 %s947_s18, %s946_s17 }
  0x23   : > { %s239_s6 = sshll.u32 %s230_s11, 4  ;;  %s948_s19 = sshll.u32 %s236_s28, 7  ;;  %s240_s6 = int_to_ptr.vmem [resolvable:$true] %s239_s6 }
  0x24   : > { %p1506_p4 = pnand %p1115_p1, %p1468_p3  ;;  %s238_s24 = scalar_lea.hbm %s1745_s0, %s948_s19 }
  0x25   : > { %s227_s20 = scalar_lea.sflag [#allocation4], %s226_s8  ;;  %s1223_s29 = scalar_lea.vmem %s240_s6, 1024 }
  0x26   : > { %p1212_p5 = pneg %p1506_p4  ;;  %p1224_p6 = scmp.ne.s32.totalorder %s240_s6, %s1223_s29 }
  0x27   : > { %s1360_s11 = smov [#allocation3]  }
  0x28   : > { %p1226_p8 = pnand %p1224_p6, %p1212_p5  ;;  %s1228_s13 = sshll.u32 %s1360_s11, 4  ;;  %s1229_s13 = int_to_ptr.vmem [resolvable:$false] %s1228_s13 }
  0x29   : > { %s1230_s28 = scalar_lea.vmem %s1229_s13, 2048  ;;  %p1231_p3 = scmp.lt.s32.totalorder %s240_s6, %s1229_s13 }
  0x2a   : > { %p1227_p9 = pneg %p1226_p8  ;;  %p1232_p10 = scmp.lt.s32.totalorder %s1230_s28, %s1223_s29 }
  0x2c   : > { %p1233_p11 = por %p1232_p10, %p1231_p3 }
  0x2e   : > { %p1234_p13 = pnand %p1233_p11, %p1227_p9 }
  0x30   : > { %1237 = shalt.err (!%p1234_p13)
}
  0x31   : > { %s1361_s14 = smov 128   ;;  %s1362_s19 = smov 8  }
  0x32   : > { %1110 = dma.hbm_to_vmem [thread:$0]  (!%p1506_p4), %s238_s24, 1024, %s240_s6, %s227_s20, %s1361_s14, %s1361_s14, %s1362_s19  }
  0x33   : > { %p949_p0 = scmp.ge.s32.totalorder %s1358_s7, 1  ;;  %p247_p1 = scmp.lt.s32.totalorder %s1358_s7, 9 }
  0x35   : > { %p248_p5 = pnand %p949_p0, %p247_p1 }
  0x36   : > { %s253_s8 = sand.u32 (!%p248_p5), 1, %s1334_s25  }
  0x37   : > { %251 = sbr.rel (%p248_p5) target bundleno = 745 (0x2e9), region = 44  ;;  %s950_s17 = sshll.u32 (!%p248_p5), %s253_s8, 6 }
  0x38   : > { %s254_s18 = scalar_lea.sflag (!%p248_p5), [#allocation4], %s253_s8  ;;  %s1520_s29 = scalar_lea.vmem (!%p248_p5), [#allocation3], %s950_s17 }
  0x3c   : > { %1309 = dma.done.wait (%p1476_p7), %s254_s18, 1024  }
  0x3d   : > { %1311 = vsyncadd (%p1476_p7), %s254_s18, 4294966272  ;;  %s283_s12 = sand.u32 1, %s1322_s22   ;;  %p951_p4 = scmp.ne.s32.totalorder %s1342_s27, 0 }
  0x3e   : > { %s1529_s6 = scalar_lea.vmem [#allocation6], %s283_s12 }
  0x3f   : > { %288 = sbr.rel (%p951_p4) target bundleno = 73 (0x49), region = 52 }
  0x44   : > { %vm289_vm0 = vcmask 523264   ;;  %v1363_v0 = vmov 0.0  }
  0x45   : > { %290 = vst.msk [vmem:[#allocation2] sm:$0xff] %vm289_vm0, %v1363_v0  ;;  %291 = vst.msk [vmem:[#allocation2 + $0x8] sm:$0xff] %vm289_vm0, %v1363_v0 }
  0x46   : > { %292 = vst.msk [vmem:[#allocation2 + $0x10] sm:$0xff] %vm289_vm0, %v1363_v0  ;;  %293 = vst.msk [vmem:[#allocation2 + $0x18] sm:$0xff] %vm289_vm0, %v1363_v0 }
  0x47   : > { %294 = vst.msk [vmem:[#allocation2 + $0x20] sm:$0xff] %vm289_vm0, %v1363_v0  ;;  %295 = vst.msk [vmem:[#allocation2 + $0x28] sm:$0xff] %vm289_vm0, %v1363_v0 }
  0x48   : > { %296 = vst.msk [vmem:[#allocation2 + $0x30] sm:$0xff] %vm289_vm0, %v1363_v0  ;;  %297 = vst.msk [vmem:[#allocation2 + $0x38] sm:$0xff] %vm289_vm0, %v1363_v0 }
  0x49 PF: > { %v306_v2 = vld [vmem:[%s1520_s29] sm:$0xff]  ;;  %vm322_vm1 = vcmask 523264   ;;  %v307_v5 = vld [vmem:[%s1520_s29 + $0x8] sm:$0xff]  ;;  %v308_v7 = vld [vmem:[%s1520_s29 + $0x10] sm:$0xff]  ;;  %p952_p7 = scmp.ne.s32.totalorder %s1342_s27, 3 }
  0x4a   : > { %v309_v11 = vld [vmem:[%s1520_s29 + $0x18] sm:$0xff]  ;;  %v310_v14 = vld [vmem:[%s1520_s29 + $0x20] sm:$0xff]  ;;  %v311_v16 = vld [vmem:[%s1520_s29 + $0x28] sm:$0xff] }
  0x4b   : > { %v312_v20 = vld [vmem:[%s1520_s29 + $0x30] sm:$0xff]  ;;  %v313_v23 = vld [vmem:[%s1520_s29 + $0x38] sm:$0xff] }
  0x4c   : > { %v298_v1 = vld [vmem:[#allocation2] sm:$0xff]  ;;  %v299_v3 = vld [vmem:[#allocation2 + $0x8] sm:$0xff] }
  0x4d   : > { %v314_v4 = vadd.f32 %v306_v2, %v298_v1  ;;  %v300_v6 = vld [vmem:[#allocation2 + $0x10] sm:$0xff]  ;;  %v315_v8 = vadd.f32 %v307_v5, %v299_v3  ;;  %v301_v10 = vld [vmem:[#allocation2 + $0x18] sm:$0xff] }
  0x4e   : > { %v316_v9 = vadd.f32 %v308_v7, %v300_v6  ;;  %v302_v12 = vld [vmem:[#allocation2 + $0x20] sm:$0xff]  ;;  %v317_v13 = vadd.f32 %v309_v11, %v301_v10  ;;  %v303_v15 = vld [vmem:[#allocation2 + $0x28] sm:$0xff]  ;;  %334 = sbr.rel (%p952_p7) target bundleno = 721 (0x2d1), region = 56 }
  0x4f   : > { %323 = vst.msk [vmem:[#allocation2] sm:$0xff] %vm322_vm1, %v314_v4  ;;  %324 = vst.msk [vmem:[#allocation2 + $0x8] sm:$0xff] %vm322_vm1, %v315_v8  ;;  %v318_v17 = vadd.f32 %v310_v14, %v302_v12  ;;  %v319_v18 = vadd.f32 %v311_v16, %v303_v15  ;;  %v304_v19 = vld [vmem:[#allocation2 + $0x30] sm:$0xff]  ;;  %v305_v21 = vld [vmem:[#allocation2 + $0x38] sm:$0xff] }
  0x50   : > { %325 = vst.msk [vmem:[#allocation2 + $0x10] sm:$0xff] %vm322_vm1, %v316_v9  ;;  %326 = vst.msk [vmem:[#allocation2 + $0x18] sm:$0xff] %vm322_vm1, %v317_v13  ;;  %v320_v22 = vadd.f32 %v312_v20, %v304_v19  ;;  %v321_v24 = vadd.f32 %v313_v23, %v305_v21 }
  0x51   : > { %327 = vst.msk [vmem:[#allocation2 + $0x20] sm:$0xff] %vm322_vm1, %v318_v17  ;;  %328 = vst.msk [vmem:[#allocation2 + $0x28] sm:$0xff] %vm322_vm1, %v319_v18 }
  0x52   : > { %329 = vst.msk [vmem:[#allocation2 + $0x30] sm:$0xff] %vm322_vm1, %v320_v22  ;;  %330 = vst.msk [vmem:[#allocation2 + $0x38] sm:$0xff] %vm322_vm1, %v321_v24 }
  0x53   : > { %v1364_v26 = vmov 0.0   ;;  %vm1365_vm2 = vmmov 0   ;;  %v448_v28 = vld [vmem:[%s1747_s2 + $0x38] sm:$0xff]  ;;  %v447_v29 = vld [vmem:[%s1747_s2 + $0x30] sm:$0xff]  ;;  %v446_v30 = vld [vmem:[%s1747_s2 + $0x28] sm:$0xff]  ;;  %vm534_vm3 = vcmask 261120  }
  0x54   : > { %1021 = vmatprep.subr.mxu0 %v1364_v26  ;;  %1037 = vmatprep.mubr.msk.f32.mxu0 %vm1365_vm2, %v1364_v26  ;;  %v445_v32 = vld [vmem:[%s1747_s2 + $0x20] sm:$0xff]  ;;  %v444_v33 = vld [vmem:[%s1747_s2 + $0x18] sm:$0xff]  ;;  %v443_v35 = vld [vmem:[%s1747_s2 + $0x10] sm:$0xff]  ;;  %vm846_vm4 = vcmask 122880  }
  0x55   : > { %1040 = vmatprep.subr.mxu1 %v1364_v26  ;;  %1056 = vmatprep.mubr.msk.f32.mxu1 %vm1365_vm2, %v1364_v26  ;;  %v442_v36 = vld [vmem:[%s1747_s2 + $0x8] sm:$0xff]  ;;  %v335_v41 = vld [vmem:[%s1746_s1] sm:$0xf]  ;;  %v973_v43 = vld [vmem:[%s1749_s4 + $0x58] sm:$0xff] }
  0x56   : > { %1041 = vmatpush3.msra.mxu1 %v448_v28  ;;  %v337_v39 = vld [vmem:[#allocation2 + $0x8] sm:$0xff]  ;;  %v336_v40 = vld [vmem:[#allocation2] sm:$0xff]  ;;  %v533_v44 = vld [vmem:[%s1749_s4 + $0x18] sm:$0xff] }
  0x57   : > { %1042 = vmatprep.subr.mxu1 %v1364_v26  ;;  %v339_v37 = vld [vmem:[#allocation2 + $0x18] sm:$0xff]  ;;  %v338_v38 = vld [vmem:[#allocation2 + $0x10] sm:$0xff]  ;;  %v441_v42 = vld [vmem:[%s1747_s2] sm:$0xff] }
  0x58   : > { %1043 = vmatpush3.msra.mxu1 %v447_v29  ;;  %v341_v31 = vld [vmem:[#allocation2 + $0x28] sm:$0xff]  ;;  %v340_v34 = vld [vmem:[#allocation2 + $0x20] sm:$0xff]  ;;  %v532_v46 = vld [vmem:[%s1749_s4 + $0x10] sm:$0xff] }
  0x59   : > { %v343_v25 = vld [vmem:[#allocation2 + $0x38] sm:$0xff]  ;;  %v342_v27 = vld [vmem:[#allocation2 + $0x30] sm:$0xff]  ;;  %1044 = vmatprep.subr.mxu1 %v1364_v26  ;;  %v531_v48 = vld [vmem:[%s1749_s4 + $0x8] sm:$0xff] }
  0x5a   : > { %1022 = vmatpush3.xpose.msk.msra.mxu0 %vm322_vm1, %v343_v25  ;;  %1045 = vmatpush3.msra.mxu1 %v446_v30  ;;  %v972_v49 = vld [vmem:[%s1749_s4 + $0x50] sm:$0xff]  ;;  %v530_v50 = vld [vmem:[%s1749_s4] sm:$0xff]  ;;  %v971_v51 = vld [vmem:[%s1749_s4 + $0x48] sm:$0xff] }
  0x5b   : > { %1023 = vmatprep.subr.mxu0 %v1364_v26  ;;  %1046 = vmatprep.subr.mxu1 %v1364_v26  ;;  %v970_v52 = vld [vmem:[%s1749_s4 + $0x40] sm:$0xff]  ;;  %v968_v56 = vld [vmem:[%s1749_s4 + $0x38] sm:$0xff]  ;;  %v967_v59 = vld [vmem:[%s1749_s4 + $0x30] sm:$0xff] }
  0x5c   : > { %1047 = vmatpush3.msra.mxu1 %v445_v32  ;;  %v962_v53 = vld [vmem:[%s1748_s3] ss:$0 sm:$0xff]  ;;  %v966_v60 = vld [vmem:[%s1749_s4 + $0x28] sm:$0xff]  ;;  %v978_v63 = vld [vmem:[%s1749_s4 + $0x78] sm:$0xff] }
  0x5d   : > { %1048 = vmatprep.subr.mxu1 %v1364_v26  ;;  %v965_v61 = vld [vmem:[%s1749_s4 + $0x20] sm:$0xff]  ;;  %v977_v0 = vld [vmem:[%s1749_s4 + $0x70] sm:$0xff]  ;;  %v976_v1 = vld [vmem:[%s1749_s4 + $0x68] sm:$0xff] }
  0x5e   : > { %1024 = vmatpush3.xpose.msk.msra.mxu0 %vm322_vm1, %v342_v27  ;;  %1049 = vmatpush3.msra.mxu1 %v444_v33  ;;  %v975_v2 = vld [vmem:[%s1749_s4 + $0x60] sm:$0xff] }
  0x5f   : > { %1025 = vmatprep.subr.mxu0 %v1364_v26  ;;  %1050 = vmatprep.subr.mxu1 %v1364_v26  ;;  %v529_v8 = vld [vmem:[%s1750_s5] sm:$0x1] }
  0x60   : > { %1051 = vmatpush3.msra.mxu1 %v443_v35 }
  0x61   : > { %1052 = vmatprep.subr.mxu1 %v1364_v26 }
  0x62   : > { %1026 = vmatpush3.xpose.msk.msra.mxu0 %vm322_vm1, %v341_v31  ;;  %1053 = vmatpush3.msra.mxu1 %v442_v36 }
  0x63   : > { %1027 = vmatprep.subr.mxu0 %v1364_v26  ;;  %1054 = vmatprep.subr.mxu1 %v1364_v26 }
  0x64   : > { %1055 = vmatpush3.msra.mxu1 %v441_v42 }
  0x65   : > { %1059 = vmatprep.subr.mxu1 %v1364_v26 }
  0x66   : > { %1028 = vmatpush3.xpose.msk.msra.mxu0 %vm322_vm1, %v340_v34 }
  0x67   : > { %1029 = vmatprep.subr.mxu0 %v1364_v26 }
  0x6a   : > { %1030 = vmatpush3.xpose.msk.msra.mxu0 %vm322_vm1, %v339_v37 }
  0x6b   : > { %1031 = vmatprep.subr.mxu0 %v1364_v26 }
  0x6e   : > { %1032 = vmatpush3.xpose.msk.msra.mxu0 %vm322_vm1, %v338_v38 }
  0x6f   : > { %1033 = vmatprep.subr.mxu0 %v1364_v26 }
  0x72   : > { %1034 = vmatpush3.xpose.msk.msra.mxu0 %vm322_vm1, %v337_v39 }
  0x73   : > { %1035 = vmatprep.subr.mxu0 %v1364_v26 }
  0x76   : > { %1036 = vmatpush3.xpose.msk.msra.mxu0 %vm322_vm1, %v336_v40 }
  0x77   : > { %1081 = vmatprep.subr.mxu0 %v1364_v26 }
  0x79   : > { %1038 = vmatmul.mubr.msk.f32.vlgmr.msra.gmra.mxu0 %vm322_vm1, %v335_v41 }
  0x7a   : > { %1089 = vmatprep.mubr.msk.f32.mxu0 %vm1365_vm2, %v1364_v26  ;;  %1082 = vmatpush3.msra.mxu0 %v973_v43 }
  0x7b   : > { %1083 = vmatprep.subr.mxu0 %v1364_v26 }
  0x7c   : > { %1084 = vmatpush3.msra.mxu0 %v972_v49 }
  0x7d   : > { %1085 = vmatprep.subr.mxu0 %v1364_v26 }
  0x7e   : > { %1086 = vmatpush3.msra.mxu0 %v971_v51 }
  0x7f   : > { %1087 = vmatprep.subr.mxu0 %v1364_v26 }
  0x80   : > { %1088 = vmatpush3.msra.mxu0 %v970_v52 }
 0x139   : > { %v437_v45 = vpop.f32.mrf.mxu0 }
 0x13a   : > { %1057 = vmatmul.mubr.msk.f32.vlgmr.msra.gmra.mxu1 %vm322_vm1, %v437_v45 }
 0x13b   : > { %v1039_v47 = vpop.f32.mrf.mxu0  ;;  %1060 = vmatpush3.msra.mxu1 %v533_v44  ;;  %1067 = vmatprep.mubr.msk.f32.mxu1 %vm1365_vm2, %v1364_v26 }
 0x13c   : > { %1061 = vmatprep.subr.mxu1 %v1364_v26 }
 0x13d   : > { %1062 = vmatpush3.msra.mxu1 %v532_v46 }
 0x13e   : > { %1063 = vmatprep.subr.mxu1 %v1364_v26 }
 0x13f   : > { %1064 = vmatpush3.msra.mxu1 %v531_v48 }
 0x140   : > { %1065 = vmatprep.subr.mxu1 %v1364_v26 }
 0x141   : > { %1066 = vmatpush3.msra.mxu1 %v530_v50 }
 0x142   : > { %1070 = vmatprep.subr.mxu1 %v1364_v26 }
 0x1fa   : > { %v525_v54 = vpop.f32.mrf.mxu1 }
 0x1fb   : > { %v526_v55 = vadd.f32 %v962_v53, %v525_v54 }
 0x1fc   : > { %v1058_v57 = vpop.f32.mrf.mxu1 }
 0x1fd   : > { %v693_v58 = vrot.slane %v526_v55, 2  ;;  %1068 = vmatmul.mubr.msk.f32.vlgmr.msra.gmra.mxu1 %vm534_vm3, %v526_v55  ;;  %v614_v62 = vrot.slane %v526_v55, 1  ;;  %v772_v3 = vrot.slane %v526_v55, 3 }
 0x1fe   : > { %1071 = vmatpush3.msra.mxu1 %v968_v56  ;;  %1078 = vmatprep.mubr.msk.f32.mxu1 %vm1365_vm2, %v1364_v26 }
 0x1ff   : > { %1072 = vmatprep.subr.mxu1 %v1364_v26  ;;  %1090 = vmatmul.mubr.msk.f32.vlgmr.msra.gmra.mxu0 %vm534_vm3, %v693_v58 }
 0x200   : > { %1073 = vmatpush3.msra.mxu1 %v967_v59 }
 0x201   : > { %1074 = vmatprep.subr.mxu1 %v1364_v26 }
 0x202   : > { %1075 = vmatpush3.msra.mxu1 %v966_v60 }
 0x203   : > { %1076 = vmatprep.subr.mxu1 %v1364_v26 }
 0x204   : > { %1077 = vmatpush3.msra.mxu1 %v965_v61 }
 0x205   : > { %1079 = vmatmul.mubr.msk.f32.vlgmr.msra.gmra.mxu1 %vm534_vm3, %v614_v62  ;;  %1092 = vmatprep.subr.mxu1 %v1364_v26 }
 0x206   : > { %1093 = vmatpush3.msra.mxu1 %v978_v63  ;;  %1100 = vmatprep.mubr.msk.f32.mxu1 %vm1365_vm2, %v1364_v26 }
 0x207   : > { %1094 = vmatprep.subr.mxu1 %v1364_v26 }
 0x208   : > { %1095 = vmatpush3.msra.mxu1 %v977_v0 }
 0x209   : > { %1096 = vmatprep.subr.mxu1 %v1364_v26 }
 0x20a   : > { %1097 = vmatpush3.msra.mxu1 %v976_v1 }
 0x20b   : > { %1098 = vmatprep.subr.mxu1 %v1364_v26 }
 0x20c   : > { %1099 = vmatpush3.msra.mxu1 %v975_v2 }
 0x20d   : > { %1101 = vmatmul.mubr.msk.f32.vlgmr.msra.gmra.mxu1 %vm534_vm3, %v772_v3 }
 0x2bd   : > { %v604_v4 = vpop.f32.mrf.mxu1 }
 0x2be   : > { %v608_v10 = vadd.f32 %v604_v4, %v529_v8 }
 0x2bf   : > { %v1069_v5 = vpop.f32.mrf.mxu1  ;;  %v762_v6 = vpop.f32.mrf.mxu0 }
 0x2c1   : > { %v1091_v7 = vpop.f32.mrf.mxu0 }
 0x2c5   : > { %v683_v9 = vpop.f32.mrf.mxu1 }
 0x2c6   : > { %v687_v12 = vadd.f32 %v683_v9, %v608_v10 }
 0x2c7   : > { %v1080_v11 = vpop.f32.mrf.mxu1 }
 0x2c8   : > { %v766_v13 = vadd.f32 %v762_v6, %v687_v12 }
 0x2cd   : > { %v841_v14 = vpop.f32.mrf.mxu1 }
 0x2ce   : > { %v845_v15 = vadd.f32 %v841_v14, %v766_v13 }
 0x2cf   : > { %v1102_v16 = vpop.f32.mrf.mxu1 }
 0x2d0   : > { %847 = vst.msk [vmem:[%s1529_s6] sm:$0x1] %vm846_vm4, %v845_v15 }
 0x2d1 PF: > { %s1771_s14 = sld [smem:[#allocation9_spill]]  ;;  %s861_s27 = sshll.u32 %s1529_s6, 4  ;;  %s862_s27 = int_to_ptr.vmem [resolvable:$true] %s861_s27 }
 0x2d2   : > { %s1773_s29 = sld [smem:[#allocation16_spill]]  ;;  %s849_s24 = scalar_lea.sflag [#allocation5], %s283_s12 }
 0x2d3   : > { %s1238_s9 = scalar_lea.vmem %s862_s27, 16  ;;  %s1366_s15 = smov [#allocation6]  }
 0x2d4   : > { %p1239_p6 = scmp.ne.s32.totalorder %s862_s27, %s1238_s9  ;;  %s1242_s11 = sshll.u32 %s1366_s15, 4  ;;  %s1243_s11 = int_to_ptr.vmem [resolvable:$false] %s1242_s11 }
 0x2d5   : > { %s1244_s13 = scalar_lea.vmem %s1243_s11, 32  ;;  %p1245_p3 = scmp.lt.s32.totalorder %s862_s27, %s1243_s11 }
 0x2d6   : > { %p1240_p8 = pnand %p1239_p6, %p1484_p12  ;;  %p1246_p10 = scmp.lt.s32.totalorder %s1244_s13, %s1238_s9 }
 0x2d7   : > { %s980_s8 = sshll.u32 %s1771_s14, 4 }
 0x2d8   : > { %s1774_s16 = smov %s1773_s29  ;;  %s859_s20 = scalar_lea.hbm %s1773_s29, %s980_s8 }
 0x2d9   : > { %p1241_p9 = pneg %p1240_p8  ;;  %p1247_p11 = por %p1246_p10, %p1245_p3 }
 0x2db   : > { %p1248_p13 = pnand %p1247_p11, %p1241_p9 }
 0x2dd   : > { %1251 = shalt.err (!%p1248_p13)
}
 0x2de   : > { %s1252_s28 = scalar_lea.hbm %s859_s20, 16  ;;  %s1256_s14 = scalar_lea.hbm %s1774_s16, 32 }
 0x2df   : > { %p1253_p0 = scmp.ne.s32.totalorder %s859_s20, %s1252_s28  ;;  %p1257_p4 = scmp.lt.s32.totalorder %s859_s20, %s1774_s16 }
 0x2e0   : > { %p1258_p7 = scmp.lt.s32.totalorder %s1256_s14, %s1252_s28 }
 0x2e1   : > { %p1254_p1 = pnand %p1253_p0, %p1484_p12 }
 0x2e2   : > { %p1259_p6 = por %p1258_p7, %p1257_p4 }
 0x2e3   : > { %p1255_p5 = pneg %p1254_p1 }
 0x2e5   : > { %p1260_p8 = pnand %p1259_p6, %p1255_p5 }
 0x2e7   : > { %1263 = shalt.err (!%p1260_p8)
}
 0x2e8   : > { %1105 = dma.vmem_to_hbm [thread:$0]  (%p1484_p12), %s862_s27, 16, %s859_s20, %s849_s24  }
 0x2e9 PF: > { %p1116_p9 = scmp.ge.s32.totalorder %s1358_s7, 2  ;;  %s873_s18 = sand.u32 1, %s1318_s21  }
 0x2ea   : > { %s874_s29 = scalar_lea.sflag [#allocation5], %s873_s18 }
 0x2eb   : > { %p1112_p3 = pnand %p1116_p9, %p1497_p2 }
 0x2ed   : > { %p1113_p10 = pneg %p1112_p3 }
 0x2ef   : > { %1313 = dma.done.wait (%p1113_p10), %s874_s29, 16  }
 0x2f0   : > { %1315 = vsyncadd (%p1113_p10), %s874_s29, 4294967280  ;;  %s22_s7 = sadd.s32 1, %s1358_s7   ;;  %s1775_s9 = sld [smem:[#allocation14_spill]] }
 0x2f1   : > { %p19_p11 = scmp.ge.s32.totalorder %s22_s7, 10   ;;  %s1776_s19 = sld [smem:[#allocation15_spill]] }
 0x2f2   : > { %s1777_s27 = sld [smem:[#allocation10_spill]]  ;;  %s1780_s21 = smov %s1322_s22 }
 0x2f3   : > { %s1778_s29 = sld [smem:[#allocation11_spill]]  ;;  %s1781_s22 = smov %s1326_s23 }
 0x2f4   : > { %s1779_s20 = sld [smem:[#allocation12_spill]]  ;;  %s1783_s24 = smov %s1334_s25 }
 0x2f5   : > { %s1784_s25 = smov %s1338_s26  ;;  %s1786_s28 = smov %s1354_s30 }
 0x2f6   : > { %s1782_s23 = smov %s1775_s9  ;;  %21 = sbr.rel (!%p19_p11) target bundleno = 11 (0xb), region = 100 }
 0x2f7   : > { %s1785_s26 = smov %s1776_s19 }
 0x2fa   : > { %s1787_s30 = smov %s1779_s20 }
 0x2fb   :  { %878 = vsyncpa [#allocation4], 1 }
 0x2fc   :  { %880 = vsyncpa [#allocation4 + $0x1], 1 }
 0x2fd   :  { %881 = vsyncpa [#allocation5], 1 }
 0x2fe   :  { %883 = vsyncpa [#allocation5 + $0x1], 1 }

</bundles_post_ra>
